<compile_context>
chip_gen: v6e
topology: v6e:2x2x1
jax: 0.10.0
libtpu: 0.0.40
codegen_flags: <defaults>
</compile_context>

<pallas_src>
import functools

import jax
import jax.numpy as jnp
from jax.experimental import pallas as pl
from jax.experimental.pallas import tpu as pltpu


def _round_up(x: int, m: int) -> int:
    return ((x + m - 1) // m) * m


def _choose_tm(m_rows: int, cap: int = 256) -> int:
    """Row tile: large for MXU row utilization, balanced so padding waste stays
    small (M=514 -> 3 tiles of 176, not pad-to-768), and >=2 tiles when M is
    big enough so v7x can shard the 'parallel' axis across its 2 TensorCores."""
    n_tiles = max(1, -(-m_rows // cap))
    if n_tiles == 1 and m_rows >= 64:
        n_tiles = 2
    tm = _round_up(-(-m_rows // n_tiles), 8)
    return max(8, min(tm, _round_up(m_rows, 8)))


def _choose_ti(inter: int) -> int:
    """Intermediate tile: large ti reduces accumulator RMW traffic and per-step
    overhead; must be a multiple of 128 dividing I (or full extent)."""
    for cand in (1024, 512, 256, 128):
        if inter % cand == 0:
            return cand
    return inter  # full extent (small shapes)


# ----------------------------------------------------------------------------
# Kernel: fused fc1 -> quick_gelu -> fc2 with intermediate-dim reduction.
# ----------------------------------------------------------------------------
def _vision_mlp_kernel(x_ref, w1_ref, b1_ref, w2_ref, b2_ref, o_ref, acc_ref,
                       *, ti: int, resident: bool):
    i = pl.program_id(1)

    @pl.when(i == 0)
    def _init():
        acc_ref[...] = jnp.zeros_like(acc_ref)

    if resident:
        # W1/W2/b1 live in VMEM for the whole grid; take this step's ti slab.
        col = pl.multiple_of(i * ti, ti)
        w1 = w1_ref[:, pl.ds(col, ti)]          # (H, ti)  bf16
        b1 = b1_ref[:, pl.ds(col, ti)]          # (1, ti)  f32
        w2 = w2_ref[pl.ds(col, ti), :]          # (ti, H)  bf16
    else:
        w1 = w1_ref[...]
        b1 = b1_ref[...]
        w2 = w2_ref[...]

    # fc1 slab: (tm, H) @ (H, ti) -> (tm, ti), f32 accumulation on the MXU.
    h = jnp.dot(x_ref[...], w1, preferred_element_type=jnp.float32)
    h = h + b1                                   # (1, ti) broadcasts

    # quick_gelu (Kosmos2 vision hidden_act): x * sigmoid(1.702 * x)
    act = h * jax.nn.sigmoid(1.702 * h)

    # fc2 partial: (tm, ti) @ (ti, H), accumulated into the resident f32 acc.
    acc_ref[...] += jnp.dot(act.astype(w2.dtype), w2,
                            preferred_element_type=jnp.float32)

    @pl.when(i == pl.num_programs(1) - 1)
    def _finalize():
        o_ref[...] = (acc_ref[...] + b2_ref[...]).astype(o_ref.dtype)


# ----------------------------------------------------------------------------
# Module-equivalent wrapper.
# ----------------------------------------------------------------------------
class Kosmos2VisionMLP:
    """JAX/Pallas equivalent of the PyTorch Kosmos2VisionMLP (quick_gelu)."""

    def __init__(self, hidden_size: int, intermediate_size: int, key):
        k1, k2, k3, k4 = jax.random.split(key, 4)
        h, i = hidden_size, intermediate_size
        # Weights stored in (in, out) layout; x @ W + b matches PyTorch's
        # x @ W_pt.T + b for the same linear map.  f32 masters + bf16 copies.
        self.w1 = jax.random.normal(k1, (h, i), jnp.float32) * (1.0 / h) ** 0.5
        self.b1 = jax.random.normal(k2, (1, i), jnp.float32) * 0.02
        self.w2 = jax.random.normal(k3, (i, h), jnp.float32) * (1.0 / i) ** 0.5
        self.b2 = jax.random.normal(k4, (1, h), jnp.float32) * 0.02
        self.w1_bf16 = self.w1.astype(jnp.bfloat16)
        self.w2_bf16 = self.w2.astype(jnp.bfloat16)
        self.hidden_size = h
        self.intermediate_size = i

    def __call__(self, hidden_states):
        orig_shape = hidden_states.shape
        out_dtype = hidden_states.dtype
        out_itemsize = out_dtype.itemsize
        H, I = self.hidden_size, self.intermediate_size

        # Layout glue only: flatten tokens, pad M up to a multiple of tm.
        x = hidden_states.reshape(-1, H)
        M = x.shape[0]
        tm = _choose_tm(M)
        ti = _choose_ti(I)
        M_pad = _round_up(M, tm)
        if M_pad != M:
            x = jnp.pad(x, ((0, M_pad - M), (0, 0)))
        x = x.astype(jnp.bfloat16)

        grid = (M_pad // tm, I // ti)

        # ---- VMEM budget: decide weight residency, size the scoped limit. ----
        bf16 = 2
        acc_bytes = tm * H * 4
        io_bytes = 2 * (tm * H * bf16) + 2 * (tm * H * out_itemsize)  # x + out (dbl-buf)
        bias_bytes = 2 * (I * 4 + H * 4)
        resident_w_bytes = 2 * (2 * H * I * bf16)        # W1+W2 bf16, assume dbl-buf
        streamed_w_bytes = 2 * (2 * H * ti * bf16)

        budget = 48 << 20            # conservative: fits v7x's 64 MiB physical VMEM
        resident = acc_bytes + io_bytes + bias_bytes + resident_w_bytes <= budget
        w_bytes = resident_w_bytes if resident else streamed_w_bytes
        needed = acc_bytes + io_bytes + bias_bytes + w_bytes
        vmem_limit = int(min(max(needed * 5 // 4 + (2 << 20), 32 << 20), 60 << 20))

        if resident:
            w1_spec = pl.BlockSpec((H, I), lambda m, i: (0, 0))
            b1_spec = pl.BlockSpec((1, I), lambda m, i: (0, 0))
            w2_spec = pl.BlockSpec((I, H), lambda m, i: (0, 0))
        else:
            w1_spec = pl.BlockSpec((H, ti), lambda m, i: (0, i))
            b1_spec = pl.BlockSpec((1, ti), lambda m, i: (0, i))
            w2_spec = pl.BlockSpec((ti, H), lambda m, i: (i, 0))

        # Advisory cost estimate with the real weight re-stream factor.
        weight_reads = 1 if resident else grid[0]
        flops = 4 * M_pad * H * I
        bytes_accessed = (M_pad * H * bf16
                          + 2 * H * I * bf16 * weight_reads
                          + (I + H) * 4
                          + M_pad * H * out_itemsize)
        cost = pl.CostEstimate(flops=flops, transcendentals=M_pad * I,
                               bytes_accessed=bytes_accessed)

        kernel = functools.partial(_vision_mlp_kernel, ti=ti, resident=resident)

        out = pl.pallas_call(
            kernel,
            out_shape=jax.ShapeDtypeStruct((M_pad, H), out_dtype),
            grid_spec=pltpu.PrefetchScalarGridSpec(
                num_scalar_prefetch=0,
                grid=grid,
                in_specs=[
                    pl.BlockSpec((tm, H), lambda m, i: (m, 0)),   # x rows (bf16)
                    w1_spec,                                      # W1 (bf16)
                    b1_spec,                                      # b1 (f32)
                    w2_spec,                                      # W2 (bf16)
                    pl.BlockSpec((1, H), lambda m, i: (0, 0)),    # b2 (f32)
                ],
                out_specs=pl.BlockSpec((tm, H), lambda m, i: (m, 0)),
                scratch_shapes=[pltpu.VMEM((tm, H), jnp.float32)],
            ),
            compiler_params=pltpu.CompilerParams(
                dimension_semantics=("parallel", "arbitrary"),
                vmem_limit_bytes=vmem_limit,
            ),
            cost_estimate=cost,
        )(x, self.w1_bf16, self.b1, self.w2_bf16, self.b2)

        if M_pad != M:
            out = out[:M]
        return out.reshape(orig_shape)


# ----------------------------------------------------------------------------
# Pure-JAX reference (mirrors the PyTorch forward) for a correctness check.
# ----------------------------------------------------------------------------
def _reference(x, w1, b1, w2, b2):
    h = jnp.einsum("...h,hi->...i", x, w1) + b1[0]
    h = h * jax.nn.sigmoid(1.702 * h)            # quick_gelu
    return jnp.einsum("...i,ih->...h", h, w2) + b2[0]


if __name__ == "__main__":
    # Small shapes consistent with the module: hidden=32, inter=128.
    # seq=16 exercises the no-pad path, seq=17 exercises row padding/slicing.
    batch, hidden, inter = 2, 32, 128

    key = jax.random.PRNGKey(0)
    k_x, k_params = jax.random.split(key)
    module = Kosmos2VisionMLP(hidden, inter, k_params)

    for seq in (16, 17):
        hidden_states = jax.random.normal(
            jax.random.fold_in(k_x, seq), (batch, seq, hidden), jnp.float32)

        out = jax.block_until_ready(module(hidden_states))
        assert out.shape == (batch, seq, hidden), out.shape

        # Module-semantics (f32) reference; kernel runs bf16 matmuls with f32
        # accumulation, so allow bf16-level tolerance.
        ref = _reference(hidden_states, module.w1, module.b1,
                         module.w2, module.b2)
        err = float(jnp.max(jnp.abs(out - ref)))
        assert jnp.allclose(out, ref, atol=5e-2, rtol=5e-2), (seq, err)

    print("KERNEL_OK")
</pallas_src>

<mosaic_0001>
module attributes {stable_mosaic.version = 11 : i64} {
  func.func @_vision_mlp_kernel(%arg0: i32, %arg1: i32, %arg2: memref<32x32xbf16, #tpu.memory_space<vmem>>, %arg3: memref<32x128xbf16, #tpu.memory_space<vmem>>, %arg4: memref<1x128xf32, #tpu.memory_space<vmem>>, %arg5: memref<128x32xbf16, #tpu.memory_space<vmem>>, %arg6: memref<1x32xf32, #tpu.memory_space<vmem>>, %arg7: memref<32x32xf32, #tpu.memory_space<vmem>>, %arg8: memref<32x32xf32, #tpu.memory_space<vmem>>) attributes {dimension_semantics = [#tpu.dimension_semantics<parallel>, #tpu.dimension_semantics<arbitrary>], iteration_bounds = array<i64: 1, 1>, scalar_prefetch = 0 : i64, scratch_operands = 1 : i64, tpu.core_type = #tpu.core_type<tc>, window_params = [{transform_indices = @transform_0, window_bounds = array<i64: 32, 32>}, {pipeline_mode = #tpu.pipeline_mode<synchronous>, transform_indices = @transform_1, window_bounds = array<i64: 32, 128>}, {pipeline_mode = #tpu.pipeline_mode<synchronous>, transform_indices = @transform_2, window_bounds = array<i64: 1, 128>}, {pipeline_mode = #tpu.pipeline_mode<synchronous>, transform_indices = @transform_3, window_bounds = array<i64: 128, 32>}, {pipeline_mode = #tpu.pipeline_mode<synchronous>, transform_indices = @transform_4, window_bounds = array<i64: 1, 32>}, {transform_indices = @transform_5, window_bounds = array<i64: 32, 32>}]} {
    %c0_i32 = arith.constant 0 : i32
    %0 = arith.cmpi eq, %arg1, %c0_i32 : i32
    %1 = arith.extui %0 : i1 to i32
    %c0_i32_0 = arith.constant 0 : i32
    %2 = arith.cmpi ne, %1, %c0_i32_0 : i32
    scf.if %2 {
      %cst_14 = arith.constant 0.000000e+00 : f32
      %31 = vector.broadcast %cst_14 : f32 to vector<32x32xf32>
      %c0_15 = arith.constant 0 : index
      %c0_16 = arith.constant 0 : index
      %32 = vector.load %arg8[%c0_15, %c0_16] : memref<32x32xf32, #tpu.memory_space<vmem>>, vector<32x32xf32>
      tpu.vector_store %arg8[%c0_15, %c0_16], %31 {strides = array<i32>} : memref<32x32xf32, #tpu.memory_space<vmem>>, vector<32x32xf32>,
    } else {
    }
    %c128_i32 = arith.constant 128 : i32
    %3 = arith.muli %arg1, %c128_i32 : i32
    %4 = tpu.assume_multiple %3, 128 : i32
    %c0 = arith.constant 0 : index
    %5 = arith.index_cast %4 : i32 to index
    %6 = vector.load %arg3[%c0, %5] : memref<32x128xbf16, #tpu.memory_space<vmem>>, vector<32x128xbf16>
    %c0_1 = arith.constant 0 : index
    %7 = arith.index_cast %4 : i32 to index
    %8 = vector.load %arg4[%c0_1, %7] : memref<1x128xf32, #tpu.memory_space<vmem>>, vector<1x128xf32>
    %9 = arith.index_cast %4 : i32 to index
    %c0_2 = arith.constant 0 : index
    %10 = vector.load %arg5[%9, %c0_2] : memref<128x32xbf16, #tpu.memory_space<vmem>>, vector<128x32xbf16>
    %c0_3 = arith.constant 0 : index
    %c0_4 = arith.constant 0 : index
    %11 = vector.load %arg2[%c0_3, %c0_4] : memref<32x32xbf16, #tpu.memory_space<vmem>>, vector<32x32xbf16>
    %cst = arith.constant dense<0.000000e+00> : vector<32x128xf32>
    %12 = tpu.matmul %11, %6, %cst {dimension_numbers = #tpu.dot_dimension_numbers<[1], [0], [0], [1], [0, 0, 1, 1], [], []>} : vector<32x32xbf16>, vector<32x128xbf16>, vector<32x128xf32> -> vector<32x128xf32>
    %13 = vector.broadcast %8 : vector<1x128xf32> to vector<32x128xf32>
    %14 = arith.addf %12, %13 : vector<32x128xf32>
    %cst_5 = arith.constant 1.702000e+00 : f32
    %15 = vector.broadcast %cst_5 : f32 to vector<32x128xf32>
    %16 = arith.mulf %15, %14 : vector<32x128xf32>
    %17 = arith.negf %16 : vector<32x128xf32>
    %18 = math.exp %17 : vector<32x128xf32>
    %cst_6 = arith.constant 1.000000e+00 : f32
    %19 = vector.broadcast %cst_6 : f32 to vector<32x128xf32>
    %20 = arith.addf %19, %18 : vector<32x128xf32>
    %21 = arith.divf %19, %20 : vector<32x128xf32>
    %22 = arith.mulf %14, %21 : vector<32x128xf32>
    %c0_7 = arith.constant 0 : index
    %c0_8 = arith.constant 0 : index
    %23 = vector.load %arg8[%c0_7, %c0_8] : memref<32x32xf32, #tpu.memory_space<vmem>>, vector<32x32xf32>
    %24 = arith.truncf %22 : vector<32x128xf32> to vector<32x128xbf16>
    %cst_9 = arith.constant dense<0.000000e+00> : vector<32x32xf32>
    %25 = tpu.matmul %24, %10, %cst_9 {dimension_numbers = #tpu.dot_dimension_numbers<[1], [0], [0], [1], [0, 0, 1, 1], [], []>} : vector<32x128xbf16>, vector<128x32xbf16>, vector<32x32xf32> -> vector<32x32xf32>
    %26 = arith.addf %23, %25 : vector<32x32xf32>
    %c0_10 = arith.constant 0 : index
    %c0_11 = arith.constant 0 : index
    %27 = vector.load %arg8[%c0_10, %c0_11] : memref<32x32xf32, #tpu.memory_space<vmem>>, vector<32x32xf32>
    tpu.vector_store %arg8[%c0_10, %c0_11], %26 {strides = array<i32>} : memref<32x32xf32, #tpu.memory_space<vmem>>, vector<32x32xf32>,
    %c0_i32_12 = arith.constant 0 : i32
    %28 = arith.cmpi eq, %arg1, %c0_i32_12 : i32
    %29 = arith.extui %28 : i1 to i32
    %c0_i32_13 = arith.constant 0 : i32
    %30 = arith.cmpi ne, %29, %c0_i32_13 : i32
    scf.if %30 {
      %c0_14 = arith.constant 0 : index
      %c0_15 = arith.constant 0 : index
      %31 = vector.load %arg8[%c0_14, %c0_15] : memref<32x32xf32, #tpu.memory_space<vmem>>, vector<32x32xf32>
      %c0_16 = arith.constant 0 : index
      %c0_17 = arith.constant 0 : index
      %32 = vector.load %arg6[%c0_16, %c0_17] : memref<1x32xf32, #tpu.memory_space<vmem>>, vector<1x32xf32>
      %33 = vector.broadcast %32 : vector<1x32xf32> to vector<32x32xf32>
      %34 = arith.addf %31, %33 : vector<32x32xf32>
      %c0_18 = arith.constant 0 : index
      %c0_19 = arith.constant 0 : index
      %35 = vector.load %arg7[%c0_18, %c0_19] : memref<32x32xf32, #tpu.memory_space<vmem>>, vector<32x32xf32>
      tpu.vector_store %arg7[%c0_18, %c0_19], %34 {strides = array<i32>} : memref<32x32xf32, #tpu.memory_space<vmem>>, vector<32x32xf32>,
    } else {
    }
    return
  }
  func.func @transform_0(%arg0: i32, %arg1: i32) -> (i32, i32) {
    %c0_i32 = arith.constant 0 : i32
    %c0_i32_0 = arith.constant 0 : i32
    return %arg0, %c0_i32 : i32, i32
  }
  func.func @transform_1(%arg0: i32, %arg1: i32) -> (i32, i32) {
    %c0_i32 = arith.constant 0 : i32
    %c0_i32_0 = arith.constant 0 : i32
    %c0_i32_1 = arith.constant 0 : i32
    return %c0_i32, %c0_i32_0 : i32, i32
  }
  func.func @transform_2(%arg0: i32, %arg1: i32) -> (i32, i32) {
    %c0_i32 = arith.constant 0 : i32
    %c0_i32_0 = arith.constant 0 : i32
    %c0_i32_1 = arith.constant 0 : i32
    return %c0_i32, %c0_i32_0 : i32, i32
  }
  func.func @transform_3(%arg0: i32, %arg1: i32) -> (i32, i32) {
    %c0_i32 = arith.constant 0 : i32
    %c0_i32_0 = arith.constant 0 : i32
    %c0_i32_1 = arith.constant 0 : i32
    return %c0_i32, %c0_i32_0 : i32, i32
  }
  func.func @transform_4(%arg0: i32, %arg1: i32) -> (i32, i32) {
    %c0_i32 = arith.constant 0 : i32
    %c0_i32_0 = arith.constant 0 : i32
    %c0_i32_1 = arith.constant 0 : i32
    return %c0_i32, %c0_i32_0 : i32, i32
  }
  func.func @transform_5(%arg0: i32, %arg1: i32) -> (i32, i32) {
    %c0_i32 = arith.constant 0 : i32
    %c0_i32_0 = arith.constant 0 : i32
    return %arg0, %c0_i32 : i32, i32
  }
}

</mosaic_0001>

<bundles_post_ra>
// kernel: tpu_custom_call.1
= control target key start
LH: loop header
LB: loop body
LE: loop exit
PB: predicated region body
PF: predicated region fallthrough
CT: control target
= control target key end

     0   :  { %vm26_vm0 = vcmask 261120   ;;  %s545_s0 = inlined_call_operand.vmem [shape: bf16[32,32], index: 0, kind: input, shape index: {}]   ;;  %s546_s1 = inlined_call_operand.vmem [shape: bf16[32,128], index: 1, kind: input, shape index: {}]   ;;  %s547_s2 = inlined_call_operand.vmem [shape: f32[1,128], index: 2, kind: input, shape index: {}]   ;;  %s548_s3 = inlined_call_operand.vmem [shape: bf16[128,32], index: 3, kind: input, shape index: {}]   ;;  %s549_s4 = inlined_call_operand.vmem [shape: f32[1,32], index: 4, kind: input, shape index: {}]   ;;  %s550_s5 = inlined_call_operand.hbm [shape: f32[32,32], index: 5, kind: output, shape index: {}]  }
   0x1   :  { %v402_v0 = vld [vmem:[%s546_s1 + $0x8] sm:$0xff]   ;;  %v403_v1 = vld [vmem:[%s546_s1] sm:$0xff]  }
   0x2   :  { %370 = vmatprep.subr.bf16.mxu0 %v402_v0  ;;  %v404_v2 = vld [vmem:[%s545_s0] sm:$0xff]   ;;  %v405_v3 = vld [vmem:[%s545_s0 + $0x8] sm:$0xff]  }
   0x3   :  { %371 = vmatpush3.bf16.msra.mxu0 %v402_v0  ;;  %374 = vmatprep.mubr.msk.bf16.mxu0 %vm26_vm0, %v404_v2 }
   0x4   :  { %372 = vmatprep.subr.bf16.mxu0 %v403_v1 }
   0x7   :  { %373 = vmatpush3.bf16.msra.mxu0 %v403_v1 }
   0x8   :  { %10 = vsyncpa [#allocation4], 0  ;;  %v406_v4 = vld [vmem:[%s548_s3 + $0x38] sm:$0xff]   ;;  %v407_v5 = vld [vmem:[%s548_s3 + $0x30] sm:$0xff]   ;;  %v452_v12 = vmov 0.0   ;;  %s453_s17 = smov [#allocation3]  }
   0x9   :  { %378 = vmatprep.subr.bf16.mxu1 %v406_v4  ;;  %v408_v6 = vld [vmem:[%s548_s3 + $0x28] sm:$0xff]   ;;  %v409_v7 = vld [vmem:[%s548_s3 + $0x20] sm:$0xff]   ;;  %v410_v8 = vld [vmem:[%s548_s3 + $0x18] sm:$0xff]   ;;  %29 = vst.msk [vmem:[#allocation2 + $0x10] sm:$0xff] %vm26_vm0, %v452_v12  ;;  %s320_s18 = sshll.u32 %s453_s17, 4  ;;  %s321_s18 = int_to_ptr.vmem [resolvable:$true] %s320_s18 }
   0xa   :  { %375 = vmatmul.mubr.msk.bf16.vlgmr.msra.gmra.mxu0 %vm26_vm0, %v405_v3  ;;  %379 = vmatpush3.bf16.msra.mxu1 %v406_v4  ;;  %v411_v9 = vld [vmem:[%s548_s3 + $0x10] sm:$0xff]   ;;  %v412_v10 = vld [vmem:[%s548_s3 + $0x8] sm:$0xff]   ;;  %v413_v11 = vld [vmem:[%s548_s3] sm:$0xff]   ;;  %27 = vst.msk [vmem:[#allocation2] sm:$0xff] %vm26_vm0, %v452_v12  ;;  %p435_p1 = scmp.lt.s32.totalorder %s321_s18, %s321_s18 }
   0xb   :  { %380 = vmatprep.subr.bf16.mxu1 %v407_v5  ;;  %28 = vst.msk [vmem:[#allocation2 + $0x8] sm:$0xff] %vm26_vm0, %v452_v12  ;;  %30 = vst.msk [vmem:[#allocation2 + $0x18] sm:$0xff] %vm26_vm0, %v452_v12  ;;  %v336_v13 = vld [vmem:[%s547_s2] ss:$0 sm:$0xff] }
   0xc   :  { %v355_v60 = vld [vmem:[%s549_s4] ss:$0 sm:$0xff]  ;;  %s430_s4 = scalar_lea.vmem %s321_s18, 512 }
   0xd   :  { %p431_p0 = scmp.ne.s32.totalorder %s321_s18, %s430_s4  ;;  %p436_p2 = scmp.lt.s32.totalorder %s430_s4, %s430_s4 }
   0xe   :  { %381 = vmatpush3.bf16.msra.mxu1 %v407_v5 }
   0xf   :  { %382 = vmatprep.subr.bf16.mxu1 %v408_v6  ;;  %p437_p3 = por %p436_p2, %p435_p1 }
  0x10   :  { %v184_v48 = vld [vmem:[#allocation2 + $0x10] sm:$0xff] }
  0x11   :  { %v182_v50 = vld [vmem:[#allocation2] sm:$0xff]  ;;  %p438_p4 = pnand %p437_p3, %p431_p0 }
  0x12   :  { %383 = vmatpush3.bf16.msra.mxu1 %v408_v6  ;;  %v185_v53 = vld [vmem:[#allocation2 + $0x18] sm:$0xff]  ;;  %v183_v56 = vld [vmem:[#allocation2 + $0x8] sm:$0xff] }
  0x13   :  { %384 = vmatprep.subr.bf16.mxu1 %v409_v7 }
  0x16   :  { %385 = vmatpush3.bf16.msra.mxu1 %v409_v7 }
  0x17   :  { %386 = vmatprep.subr.bf16.mxu1 %v410_v8 }
  0x1a   :  { %387 = vmatpush3.bf16.msra.mxu1 %v410_v8 }
  0x1b   :  { %388 = vmatprep.subr.bf16.mxu1 %v411_v9 }
  0x1e   :  { %389 = vmatpush3.bf16.msra.mxu1 %v411_v9 }
  0x1f   :  { %390 = vmatprep.subr.bf16.mxu1 %v412_v10 }
  0x22   :  { %391 = vmatpush3.bf16.msra.mxu1 %v412_v10 }
  0x23   :  { %392 = vmatprep.subr.bf16.mxu1 %v413_v11 }
  0x26   :  { %393 = vmatpush3.bf16.msra.mxu1 %v413_v11 }
  0xca   :  { %v376_v14 = vpop.f32.mrf.mxu0 }
  0xcb   :  { %v144_v15 = vadd.f32 %v376_v14, %v336_v13 }
  0xcc   :  { %v135_v16 = vpop.f32.mrf.mxu0 }
  0xcd   :  { %v345_v17 = vmul.f32 -1.702, %v144_v15  ;;  %v136_v18 = vadd.f32 %v336_v13, %v135_v16 }
  0xce   :  { %v377_v19 = vpop.f32.mrf.mxu0 }
  0xcf   :  { %v162_v20 = vmul.f32 1.442695, %v345_v17  ;;  %v343_v21 = vmul.f32 -1.702, %v136_v18  ;;  %v147_v22 = vadd.f32 %v377_v19, %v336_v13 }
  0xd0   :  { %v138_v23 = vpop.f32.mrf.mxu0 }
  0xd1   :  { %v158_v24 = vmul.f32 1.442695, %v343_v21  ;;  %v346_v25 = vmul.f32 -1.702, %v147_v22  ;;  %v139_v26 = vadd.f32 %v336_v13, %v138_v23  ;;  %414 = vpow2.f32 %v162_v20 }
  0xd3   :  { %416 = vpow2.f32 %v158_v24  ;;  %v164_v27 = vmul.f32 1.442695, %v346_v25  ;;  %v344_v28 = vmul.f32 -1.702, %v139_v26 }
  0xd5   :  { %418 = vpow2.f32 %v164_v27  ;;  %v160_v29 = vmul.f32 1.442695, %v344_v28 }
  0xd7   :  { %420 = vpow2.f32 %v160_v29 }
  0xde   :  { %v415_v30 = vpop.eup %414 }
  0xdf   :  { %v168_v34 = vadd.f32 1.0, %v415_v30 }
  0xe0   :  { %v417_v31 = vpop.eup %416 }
  0xe1   :  { %v166_v32 = vadd.f32 1.0, %v417_v31 }
  0xe2   :  { %v419_v33 = vpop.eup %418 }
  0xe3   :  { %v169_v35 = vadd.f32 1.0, %v419_v33  ;;  %422 = vrcp.f32 %v166_v32 }
  0xe4   :  { %v421_v36 = vpop.eup %420 }
  0xe5   :  { %424 = vrcp.f32 %v169_v35  ;;  %v167_v37 = vadd.f32 1.0, %v421_v36 }
  0xe6   :  { %426 = vrcp.f32 %v168_v34 }
  0xe7   :  { %428 = vrcp.f32 %v167_v37 }
  0xf0   :  { %v423_v38 = vpop.eup %422 }
  0xf1   :  { %v178_v43 = vmul.f32 %v423_v38, %v136_v18 }
  0xf2   :  { %v425_v39 = vpop.eup %424 }
  0xf3   :  { %v427_v40 = vpop.eup %426  ;;  %v181_v42 = vmul.f32 %v425_v39, %v147_v22 }
  0xf4   :  { %v429_v41 = vpop.eup %428  ;;  %v180_v45 = vmul.f32 %v427_v40, %v144_v15 }
  0xf5   :  { %v179_v44 = vmul.f32 %v429_v41, %v139_v26 }
  0xf6   :  { %v187_v47 = vpack.c.bf16 %v181_v42, %v180_v45 }
  0xf7   :  { %v186_v46 = vpack.c.bf16 %v179_v44, %v178_v43 }
  0xf9   :  { %394 = vmatprep.mubr.bf16.mxu1 %v186_v46 }
  0xfa   :  { %395 = vmatmul.mubr.bf16.vlgmr.msra.gmra.mxu1 %v187_v47 }
 0x1ba   :  { %v396_v49 = vpop.f32.mrf.mxu1 }
 0x1bb   :  { %v287_v51 = vadd.f32 %v396_v49, %v184_v48 }
 0x1bc   :  { %v270_v52 = vpop.f32.mrf.mxu1 }
 0x1bd   :  { %291 = vst.msk [vmem:[#allocation2 + $0x10] sm:$0xff] %vm26_vm0, %v287_v51  ;;  %v285_v54 = vadd.f32 %v270_v52, %v182_v50 }
 0x1be   :  { %v397_v55 = vpop.f32.mrf.mxu1 }
 0x1bf   :  { %289 = vst.msk [vmem:[#allocation2] sm:$0xff] %vm26_vm0, %v285_v54  ;;  %v288_v57 = vadd.f32 %v397_v55, %v185_v53 }
 0x1c0   :  { %v273_v58 = vpop.f32.mrf.mxu1 }
 0x1c1   :  { %292 = vst.msk [vmem:[#allocation2 + $0x18] sm:$0xff] %vm26_vm0, %v288_v57  ;;  %v286_v59 = vadd.f32 %v273_v58, %v183_v56 }
 0x1c3   :  { %290 = vst.msk [vmem:[#allocation2 + $0x8] sm:$0xff] %vm26_vm0, %v286_v59 }
 0x1c4   :  { %v298_v61 = vld [vmem:[#allocation2 + $0x10] sm:$0xff] }
 0x1c5   :  { %v309_v62 = vadd.f32 %v355_v60, %v298_v61 }
 0x1c6   :  { %v296_v63 = vld [vmem:[#allocation2] sm:$0xff] }
 0x1c7   :  { %v307_v0 = vadd.f32 %v355_v60, %v296_v63  ;;  %313 = vst.msk [vmem:[#allocation3 + $0x10] sm:$0xff] %vm26_vm0, %v309_v62 }
 0x1c8   :  { %v299_v1 = vld [vmem:[#allocation2 + $0x18] sm:$0xff] }
 0x1c9   :  { %v310_v2 = vadd.f32 %v355_v60, %v299_v1  ;;  %311 = vst.msk [vmem:[#allocation3] sm:$0xff] %vm26_vm0, %v307_v0 }
 0x1ca   :  { %v297_v3 = vld [vmem:[#allocation2 + $0x8] sm:$0xff] }
 0x1cb   :  { %v308_v4 = vadd.f32 %v355_v60, %v297_v3  ;;  %314 = vst.msk [vmem:[#allocation3 + $0x18] sm:$0xff] %vm26_vm0, %v310_v2 }
 0x1cd   :  { %312 = vst.msk [vmem:[#allocation3 + $0x8] sm:$0xff] %vm26_vm0, %v308_v4 }
 0x1ce   :  { %441 = shalt.err (!%p438_p4)
}
 0x1cf   :  { %s454_s19 = smov 128   ;;  %s455_s20 = smov 8  }
 0x1d0   :  { %326 = dma.vmem_to_hbm [thread:$0]  %s321_s18, 512, %s550_s5, [#allocation4], %s454_s19, %s454_s19, %s455_s20  }
 0x1d1   :  { %450 = dma.done.wait [#allocation4], 512  }
 0x1d2   :  { %451 = vsyncadd [#allocation4], 4294966784 }
 0x1d3   :  { %330 = vsyncpa [#allocation4], 1 }

</bundles_post_ra>
